<compile_context>
chip_gen: v7x
topology: tpu7x:2x2x1
jax: 0.10.0
libtpu: 0.0.40
codegen_flags: <defaults>
</compile_context>

<pallas_src>
import functools

import jax
import jax.numpy as jnp
from jax import lax
from jax.experimental import pallas as pl
from jax.experimental.pallas import tpu as pltpu


def _round_up(x, m):
    return (x + m - 1) // m * m


# ----------------------------------------------------------------------------
# Generation-aware sizing
# ----------------------------------------------------------------------------
def _chip_config():
    """Per-generation kernel sizing; conservative defaults if detection fails."""
    kind = ""
    try:
        kind = jax.devices()[0].device_kind.lower()
    except Exception:
        pass
    if "7" in kind:          # v7x: 2 TCs/chip, 64 MiB VMEM
        return dict(name="v7x", dual_tc=True, m_target=8192,
                    vmem_cap=32 * 1024 * 1024, bf16_epilogue=True)
    if any(t in kind for t in ("v2", "v3", "v4", "v5")):
        return dict(name="v5e_or_older", dual_tc=False, m_target=16384,
                    vmem_cap=96 * 1024 * 1024, bf16_epilogue=False)
    return dict(name="v6e", dual_tc=False, m_target=16384,
                vmem_cap=96 * 1024 * 1024, bf16_epilogue=True)


# ----------------------------------------------------------------------------
# Plain-JAX glue: farthest point sampling, ball query
# ----------------------------------------------------------------------------
def farthest_point_sample(xyz, npoint, start_idx):
    """xyz: (B, N, 3) -> (B, npoint) int32 indices."""
    B, N, _ = xyz.shape
    batch = jnp.arange(B)

    def body(i, carry):
        centroids, distance, farthest = carry
        centroids = centroids.at[:, i].set(farthest)
        centroid = xyz[batch, farthest][:, None, :]           # (B, 1, 3)
        dist = jnp.sum((xyz - centroid) ** 2, axis=-1)        # (B, N)
        distance = jnp.minimum(distance, dist)
        farthest = jnp.argmax(distance, axis=-1).astype(jnp.int32)
        return centroids, distance, farthest

    centroids0 = jnp.zeros((B, npoint), dtype=jnp.int32)
    distance0 = jnp.full((B, N), 1e10, dtype=jnp.float32)
    centroids, _, _ = lax.fori_loop(
        0, npoint, body, (centroids0, distance0, start_idx.astype(jnp.int32)))
    return centroids


def ball_query(centroids, xyz, radius, max_samples):
    """centroids: (B, npoint, 3), xyz: (B, N, 3) -> (B, npoint, max_samples).

    Squared-distance compare (d < r <=> d^2 < r^2, no sqrt over (B,np,N)) and a
    top-k partial selection instead of a full sort over N.
    Unfilled slots are 0, matching the torch.zeros init of the reference.
    """
    B, npoint, _ = centroids.shape
    N = xyz.shape[1]
    d2 = jnp.sum((centroids[:, :, None, :] - xyz[:, None, :, :]) ** 2, axis=-1)
    mask = d2 < (radius * radius)
    idx = jnp.arange(N, dtype=jnp.int32)
    # valid indices keep their ascending value; invalid ones pushed to N
    scores = jnp.where(mask, idx[None, None, :], N)
    k = int(min(max_samples, N))
    neg_vals, _ = lax.top_k(-scores, k)          # k smallest scores, ascending
    picked = -neg_vals
    if k < max_samples:
        picked = jnp.pad(picked, ((0, 0), (0, 0), (0, max_samples - k)),
                         constant_values=N)
    return jnp.where(picked < N, picked, 0).astype(jnp.int32)


# ----------------------------------------------------------------------------
# Pallas kernel: shared MLP (1x1 conv == channel matmul) + ReLU + max(samples)
# ----------------------------------------------------------------------------
def _mlp_max_kernel(x_ref, *refs, bf16_epilogue):
    out_ref = refs[-1]
    params = refs[:-1]
    n_layers = len(params) // 2

    g, s, cin = x_ref.shape
    # One big 2-D matmul per layer: present M = g*s rows to the MXU.
    h = x_ref[...].reshape(g * s, cin)                        # bf16
    for l in range(n_layers):
        w = params[2 * l][...]                                # (C_in_l, C_out_l) bf16
        b = params[2 * l + 1][...]                            # (1, C_out_l)
        acc = jnp.dot(h, w, preferred_element_type=jnp.float32)   # MXU, f32 acc
        if bf16_epilogue:
            # v6e/v7x: bf16-native VPU -> bias + ReLU in bf16
            h = jnp.maximum(acc.astype(jnp.bfloat16) + b, 0.0)
        else:
            # v5e and older: keep the elementwise epilogue in f32
            acc = jnp.maximum(acc + b, 0.0)
            h = acc.astype(jnp.bfloat16) if l + 1 < n_layers else acc
    cout = h.shape[-1]
    # max over samples: sublane/XLU reduction (f32; upcast of bf16 is exact)
    hf = h.astype(jnp.float32)
    out_ref[...] = jnp.max(hf.reshape(g, s, cout), axis=1)


def _vmem_bytes(tile_g, s_pad, cin_pad, cout_pad, widths, bf16_epi):
    """Rough per-step VMEM footprint: double-buffered I/O, lane-padded (128)
    f32 MXU accumulators + epilogue activations, small weight/bias buffers."""
    m = tile_g * s_pad
    act = 2 if bf16_epi else 4
    est = 2 * tile_g * s_pad * cin_pad * 2        # input block, bf16, 2 buffers
    est += 2 * tile_g * cout_pad * 4              # output block, f32, 2 buffers
    est += m * 128 * 2                            # reshaped input copy
    ci = cin_pad
    for w in widths:
        est += m * max(128, w) * (4 + act)        # f32 acc + epilogue activation
        est += 2 * (ci * w * 2 + w * 4)           # weights + bias, 2 buffers
        ci = w
    return est


def _choose_tile(G, s_pad, cin_pad, cout_pad, widths, bf16_epi, cfg, tile_g):
    if tile_g is None:
        tile_g = max(8, _round_up(cfg['m_target'] // max(s_pad, 1), 8))
        tile_g = min(tile_g, _round_up(G, 8))
        # Keep >= 2 grid steps per TC only where it buys anything: v7x (2 TCs).
        # On single-TC chips this would just halve the matmul M for nothing.
        if cfg['dual_tc'] and G > 16:
            tile_g = max(8, min(tile_g, _round_up(-(-G // 4), 8)))
    # shrink until the footprint comfortably fits the generation's VMEM budget
    while tile_g > 8 and _vmem_bytes(tile_g, s_pad, cin_pad, cout_pad, widths,
                                     bf16_epi) > int(0.75 * cfg['vmem_cap']):
        tile_g = max(8, _round_up(tile_g // 2, 8))
    est = _vmem_bytes(tile_g, s_pad, cin_pad, cout_pad, widths, bf16_epi)
    vmem_limit = min(cfg['vmem_cap'], max(32 * 1024 * 1024, int(1.5 * est)))
    return tile_g, vmem_limit


def mlp_and_max(x, weights, biases, *, tile_g=None, cfg=None):
    """x: (G, S, C_in) float -> (G, C_out) f32 via a Pallas kernel."""
    if cfg is None:
        cfg = _chip_config()
    bf16_epi = cfg['bf16_epilogue']

    G, S, Cin = x.shape
    n_layers = len(weights)
    Cout = weights[-1].shape[1]

    # channel padding: K multiple of 8 (minor dim of the dominant HBM stream,
    # do NOT widen to 128); last-layer output multiple of 128 (lane-dense store)
    cin_pad = _round_up(Cin, 8)
    cout_pad = _round_up(Cout, 128)

    w_list, b_list = [], []
    for l, (w, b) in enumerate(zip(weights, biases)):
        ci, co = w.shape
        ci_p = cin_pad if l == 0 else ci
        co_p = cout_pad if l == n_layers - 1 else co
        w_p = jnp.pad(w.astype(jnp.float32), ((0, ci_p - ci), (0, co_p - co)))
        b_p = jnp.pad(jnp.reshape(b, (1, co)).astype(jnp.float32),
                      ((0, 0), (0, co_p - co)))
        w_list.append(w_p.astype(jnp.bfloat16))
        b_list.append(b_p.astype(jnp.bfloat16) if bf16_epi else b_p)

    x = x.astype(jnp.bfloat16)
    # Fallback S padding (normally already done at the gidx level by the
    # caller): replicate sample 0 (max-invariant); 16 = bf16 sublane packing.
    s_pad = _round_up(S, 16)
    if s_pad != S:
        x = jnp.concatenate(
            [x, jnp.broadcast_to(x[:, :1, :], (G, s_pad - S, Cin))], axis=1)

    widths = [w.shape[1] for w in weights]
    tile_g, vmem_limit = _choose_tile(G, s_pad, cin_pad, cout_pad, widths,
                                      bf16_epi, cfg, tile_g)

    g_pad = _round_up(G, tile_g)
    n_steps = g_pad // tile_g
    if cfg['dual_tc'] and n_steps > 1 and n_steps % 2 == 1:
        g_pad += tile_g                    # even step count across the 2 TCs
        n_steps += 1

    # single zero-pad pass over the already-bf16 tensor (groups + channels)
    if g_pad != G or cin_pad != Cin:
        x = jnp.pad(x, ((0, g_pad - G), (0, 0), (0, cin_pad - Cin)))

    in_specs = [pl.BlockSpec((tile_g, s_pad, cin_pad), lambda i: (i, 0, 0))]
    args = [x]
    for w_p, b_p in zip(w_list, b_list):
        in_specs.append(pl.BlockSpec(w_p.shape, lambda i: (0, 0)))
        in_specs.append(pl.BlockSpec(b_p.shape, lambda i: (0, 0)))
        args += [w_p, b_p]
    out_spec = pl.BlockSpec((tile_g, cout_pad), lambda i: (i, 0))

    # Output kept f32 to preserve the module's output dtype; switch to bf16 if
    # the consumer re-casts anyway (halves the writeback).
    out = pl.pallas_call(
        functools.partial(_mlp_max_kernel, bf16_epilogue=bf16_epi),
        out_shape=jax.ShapeDtypeStruct((g_pad, cout_pad), jnp.float32),
        grid=(n_steps,),
        in_specs=in_specs,
        out_specs=out_spec,
        compiler_params=pltpu.CompilerParams(
            dimension_semantics=("parallel",),
            vmem_limit_bytes=vmem_limit),
    )(*args)
    return out[:G, :Cout]


def mlp_and_max_reference(x, weights, biases, *, bf16_epilogue):
    """Pure-JAX reference with the same precision pipeline as the kernel."""
    G, S, Cin = x.shape
    n_layers = len(weights)
    h = x.astype(jnp.bfloat16).reshape(G * S, Cin)
    for l, (w, b) in enumerate(zip(weights, biases)):
        acc = jnp.dot(h, w.astype(jnp.bfloat16),
                      preferred_element_type=jnp.float32)
        b = jnp.reshape(b, (1, -1))
        if bf16_epilogue:
            h = jnp.maximum(acc.astype(jnp.bfloat16) + b.astype(jnp.bfloat16),
                            0.0)
        else:
            acc = jnp.maximum(acc + b.astype(jnp.float32), 0.0)
            h = acc.astype(jnp.bfloat16) if l + 1 < n_layers else acc
    return jnp.max(h.astype(jnp.float32).reshape(G, S, -1), axis=1)


# ----------------------------------------------------------------------------
# SetAbstraction forward
# ----------------------------------------------------------------------------
def set_abstraction_forward(xyz, points, params, *, npoint, radius,
                            max_samples, tile_g=None, use_pallas=True):
    B, N, _ = xyz.shape
    cfg = _chip_config()

    cidx = farthest_point_sample(xyz, npoint, params['fps_start'])
    b2 = jnp.arange(B)[:, None]
    centroids = xyz[b2, cidx]                                 # (B, npoint, 3) f32

    gidx = ball_query(centroids, xyz, radius, max_samples)    # (B, npoint, S)

    # Pad S at the *index* level (max-invariant: replicate sample 0) so the
    # grouped feature tensor is built exactly once at its padded size.
    s_pad = _round_up(max_samples, 16)
    if s_pad != max_samples:
        gidx = jnp.concatenate(
            [gidx, jnp.broadcast_to(gidx[..., :1],
                                    (B, npoint, s_pad - max_samples))], axis=-1)

    # Cast to bf16 BEFORE the gather/concat -> halves the dominant HBM stream.
    xyz_bf = xyz.astype(jnp.bfloat16)
    cent_bf = centroids.astype(jnp.bfloat16)
    b3 = jnp.arange(B)[:, None, None]
    grouped_xyz = xyz_bf[b3, gidx] - cent_bf[:, :, None, :]   # (B, npoint, s_pad, 3)
    if points is not None:
        grouped_points = points.astype(jnp.bfloat16)[b3, gidx]
        grouped_input = jnp.concatenate([grouped_xyz, grouped_points], axis=-1)
    else:
        grouped_input = grouped_xyz
    # TODO(synk): fuse this gather into the kernel (PrefetchScalarGridSpec +
    #             per-group DMA from HBM) so grouped_input never hits HBM.

    G = B * npoint
    Cin = grouped_input.shape[-1]
    x = grouped_input.reshape(G, s_pad, Cin)                  # bf16

    if use_pallas:
        new_points = mlp_and_max(x, params['weights'], params['biases'],
                                 tile_g=tile_g, cfg=cfg)
    else:
        new_points = mlp_and_max_reference(x, params['weights'],
                                           params['biases'],
                                           bf16_epilogue=cfg['bf16_epilogue'])

    new_points = new_points.reshape(B, npoint, -1)            # (B, npoint, C_out)
    return centroids, new_points


# ----------------------------------------------------------------------------
# Deterministic parameter construction (Conv2d 1x1 + folded eval-mode BN)
# ----------------------------------------------------------------------------
def init_params(key, in_channels, mlp_channels, B, N, eps=1e-5):
    weights, biases = [], []
    c_prev = in_channels
    for c_out in mlp_channels:
        key, kw, kb, kg, kbe, km, kv = jax.random.split(key, 7)
        w = jax.random.normal(kw, (c_out, c_prev), jnp.float32) * 0.1
        b = jax.random.normal(kb, (c_out,), jnp.float32) * 0.05
        gamma = 1.0 + 0.1 * jax.random.normal(kg, (c_out,), jnp.float32)
        beta = 0.05 * jax.random.normal(kbe, (c_out,), jnp.float32)
        mean = 0.05 * jax.random.normal(km, (c_out,), jnp.float32)
        var = 1.0 + 0.1 * jax.random.uniform(kv, (c_out,), jnp.float32)
        scale = gamma / jnp.sqrt(var + eps)
        w_eff = (scale[:, None] * w).T                        # (C_in, C_out)
        b_eff = (scale * (b - mean) + beta).reshape(1, c_out) # (1, C_out)
        weights.append(w_eff)
        biases.append(b_eff)
        c_prev = c_out
    key, ks = jax.random.split(key)
    fps_start = jax.random.randint(ks, (B,), 0, N, dtype=jnp.int32)
    return {'weights': weights, 'biases': biases, 'fps_start': fps_start}


# ----------------------------------------------------------------------------
if __name__ == "__main__":
    B, N, C_feat = 2, 32, 4
    npoint, radius, max_samples = 8, 0.5, 16
    mlp_channels = [16, 32]
    in_channels = 3 + C_feat

    key = jax.random.PRNGKey(0)
    k_xyz, k_pts, k_par = jax.random.split(key, 3)
    xyz = jax.random.uniform(k_xyz, (B, N, 3), jnp.float32)
    points = jax.random.normal(k_pts, (B, N, C_feat), jnp.float32)
    params = init_params(k_par, in_channels, mlp_channels, B, N)

    centroids, new_points = set_abstraction_forward(
        xyz, points, params, npoint=npoint, radius=radius,
        max_samples=max_samples, use_pallas=True)
    centroids = jax.block_until_ready(centroids)
    new_points = jax.block_until_ready(new_points)

    # silent self-check against a pure-JAX reference of the same forward
    c_ref, np_ref = set_abstraction_forward(
        xyz, points, params, npoint=npoint, radius=radius,
        max_samples=max_samples, use_pallas=False)
    assert centroids.shape == (B, npoint, 3)
    assert new_points.shape == (B, npoint, mlp_channels[-1])
    assert jnp.allclose(centroids, c_ref, atol=1e-5, rtol=1e-5)
    assert jnp.allclose(new_points, np_ref, atol=1e-2, rtol=1e-2)

    print("KERNEL_OK")
</pallas_src>

<mosaic_0001>
module attributes {stable_mosaic.version = 11 : i64} {
  func.func @_mlp_max_kernel(%arg0: i32, %arg1: memref<16x16x8xbf16, #tpu.memory_space<vmem>>, %arg2: memref<8x16xbf16, #tpu.memory_space<vmem>>, %arg3: memref<1x16xbf16, #tpu.memory_space<vmem>>, %arg4: memref<16x128xbf16, #tpu.memory_space<vmem>>, %arg5: memref<1x128xbf16, #tpu.memory_space<vmem>>, %arg6: memref<16x128xf32, #tpu.memory_space<vmem>>) attributes {dimension_semantics = [#tpu.dimension_semantics<parallel>], iteration_bounds = array<i64: 1>, scalar_prefetch = 0 : i64, scratch_operands = 0 : i64, tpu.core_type = #tpu.core_type<tc>, window_params = [{transform_indices = @transform_0, window_bounds = array<i64: 16, 16, 8>}, {pipeline_mode = #tpu.pipeline_mode<synchronous>, transform_indices = @transform_1, window_bounds = array<i64: 8, 16>}, {pipeline_mode = #tpu.pipeline_mode<synchronous>, transform_indices = @transform_2, window_bounds = array<i64: 1, 16>}, {pipeline_mode = #tpu.pipeline_mode<synchronous>, transform_indices = @transform_3, window_bounds = array<i64: 16, 128>}, {pipeline_mode = #tpu.pipeline_mode<synchronous>, transform_indices = @transform_4, window_bounds = array<i64: 1, 128>}, {transform_indices = @transform_5, window_bounds = array<i64: 16, 128>}]} {
    %c0 = arith.constant 0 : index
    %c0_0 = arith.constant 0 : index
    %c0_1 = arith.constant 0 : index
    %0 = vector.load %arg1[%c0, %c0_0, %c0_1] : memref<16x16x8xbf16, #tpu.memory_space<vmem>>, vector<16x16x8xbf16>
    %1 = vector.shape_cast %0 : vector<16x16x8xbf16> to vector<256x8xbf16>
    %c0_2 = arith.constant 0 : index
    %c0_3 = arith.constant 0 : index
    %2 = vector.load %arg2[%c0_2, %c0_3] : memref<8x16xbf16, #tpu.memory_space<vmem>>, vector<8x16xbf16>
    %c0_4 = arith.constant 0 : index
    %c0_5 = arith.constant 0 : index
    %3 = vector.load %arg3[%c0_4, %c0_5] : memref<1x16xbf16, #tpu.memory_space<vmem>>, vector<1x16xbf16>
    %cst = arith.constant dense<0.000000e+00> : vector<256x16xf32>
    %4 = tpu.matmul %1, %2, %cst {dimension_numbers = #tpu.dot_dimension_numbers<[1], [0], [0], [1], [0, 0, 1, 1], [], []>} : vector<256x8xbf16>, vector<8x16xbf16>, vector<256x16xf32> -> vector<256x16xf32>
    %5 = arith.truncf %4 : vector<256x16xf32> to vector<256x16xbf16>
    %6 = vector.broadcast %3 : vector<1x16xbf16> to vector<256x16xbf16>
    %7 = arith.addf %5, %6 : vector<256x16xbf16>
    %cst_6 = arith.constant 0.000000e+00 : bf16
    %8 = vector.broadcast %cst_6 : bf16 to vector<256x16xbf16>
    %9 = arith.maximumf %7, %8 : vector<256x16xbf16>
    %c0_7 = arith.constant 0 : index
    %c0_8 = arith.constant 0 : index
    %10 = vector.load %arg4[%c0_7, %c0_8] : memref<16x128xbf16, #tpu.memory_space<vmem>>, vector<16x128xbf16>
    %c0_9 = arith.constant 0 : index
    %c0_10 = arith.constant 0 : index
    %11 = vector.load %arg5[%c0_9, %c0_10] : memref<1x128xbf16, #tpu.memory_space<vmem>>, vector<1x128xbf16>
    %cst_11 = arith.constant dense<0.000000e+00> : vector<256x128xf32>
    %12 = tpu.matmul %9, %10, %cst_11 {dimension_numbers = #tpu.dot_dimension_numbers<[1], [0], [0], [1], [0, 0, 1, 1], [], []>} : vector<256x16xbf16>, vector<16x128xbf16>, vector<256x128xf32> -> vector<256x128xf32>
    %13 = arith.truncf %12 : vector<256x128xf32> to vector<256x128xbf16>
    %14 = vector.broadcast %11 : vector<1x128xbf16> to vector<256x128xbf16>
    %15 = arith.addf %13, %14 : vector<256x128xbf16>
    %cst_12 = arith.constant 0.000000e+00 : bf16
    %16 = vector.broadcast %cst_12 : bf16 to vector<256x128xbf16>
    %17 = arith.maximumf %15, %16 : vector<256x128xbf16>
    %18 = arith.extf %17 : vector<256x128xbf16> to vector<256x128xf32>
    %19 = vector.shape_cast %18 : vector<256x128xf32> to vector<16x16x128xf32>
    %cst_13 = arith.constant dense<0xFF800000> : vector<16x128xf32>
    %20 = vector.multi_reduction <maximumf>, %19, %cst_13 [1] : vector<16x16x128xf32> to vector<16x128xf32>
    %c0_14 = arith.constant 0 : index
    %c0_15 = arith.constant 0 : index
    %21 = vector.load %arg6[%c0_14, %c0_15] : memref<16x128xf32, #tpu.memory_space<vmem>>, vector<16x128xf32>
    tpu.vector_store %arg6[%c0_14, %c0_15], %20 {strides = array<i32>} : memref<16x128xf32, #tpu.memory_space<vmem>>, vector<16x128xf32>,
    return
  }
  func.func @transform_0(%arg0: i32) -> (i32, i32, i32) {
    %c0_i32 = arith.constant 0 : i32
    %c0_i32_0 = arith.constant 0 : i32
    %c0_i32_1 = arith.constant 0 : i32
    return %arg0, %c0_i32, %c0_i32_0 : i32, i32, i32
  }
  func.func @transform_1(%arg0: i32) -> (i32, i32) {
    %c0_i32 = arith.constant 0 : i32
    %c0_i32_0 = arith.constant 0 : i32
    %c0_i32_1 = arith.constant 0 : i32
    return %c0_i32, %c0_i32_0 : i32, i32
  }
  func.func @transform_2(%arg0: i32) -> (i32, i32) {
    %c0_i32 = arith.constant 0 : i32
    %c0_i32_0 = arith.constant 0 : i32
    %c0_i32_1 = arith.constant 0 : i32
    return %c0_i32, %c0_i32_0 : i32, i32
  }
  func.func @transform_3(%arg0: i32) -> (i32, i32) {
    %c0_i32 = arith.constant 0 : i32
    %c0_i32_0 = arith.constant 0 : i32
    %c0_i32_1 = arith.constant 0 : i32
    return %c0_i32, %c0_i32_0 : i32, i32
  }
  func.func @transform_4(%arg0: i32) -> (i32, i32) {
    %c0_i32 = arith.constant 0 : i32
    %c0_i32_0 = arith.constant 0 : i32
    %c0_i32_1 = arith.constant 0 : i32
    return %c0_i32, %c0_i32_0 : i32, i32
  }
  func.func @transform_5(%arg0: i32) -> (i32, i32) {
    %c0_i32 = arith.constant 0 : i32
    %c0_i32_0 = arith.constant 0 : i32
    return %arg0, %c0_i32 : i32, i32
  }
}

</mosaic_0001>

<bundles_post_ra>
// kernel: tpu_custom_call.1
= control target key start
LH: loop header
LB: loop body
LE: loop exit
PB: predicated region body
PF: predicated region fallthrough
CT: control target
= control target key end

     0   :  { %vm185_vm0 = vcmask 1043456   ;;  %vm136_vm1 = vcmask 64512   ;;  %s1304_s0 = inlined_call_operand.vmem [shape: bf16[16,16,8], index: 0, kind: input, shape index: {}]   ;;  %s1305_s1 = inlined_call_operand.vmem [shape: bf16[8,16], index: 1, kind: input, shape index: {}]   ;;  %s1306_s2 = inlined_call_operand.vmem [shape: bf16[1,16], index: 2, kind: input, shape index: {}]   ;;  %s1307_s3 = inlined_call_operand.vmem [shape: bf16[16,128], index: 3, kind: input, shape index: {}]   ;;  %s1308_s4 = inlined_call_operand.vmem [shape: bf16[1,128], index: 4, kind: input, shape index: {}]   ;;  %s1309_s5 = inlined_call_operand.hbm [shape: f32[16,128], index: 5, kind: output, shape index: {}]  }
   0x1   :  { %v54_v0 = vld [vmem:[%s1305_s1] sm:$0xf]  ;;  %v1037_v3 = vld [vmem:[%s1304_s0 + $0x8] sm:$0xff]   ;;  %v1038_v4 = vld [vmem:[%s1304_s0 + $0x10] sm:$0xff]  }
   0x2   :  { %v1036_v1 = vld [vmem:[%s1304_s0] sm:$0xff]   ;;  %1031 = vmatprep.subr.msk.bf16.mxu0 %vm185_vm0, %v54_v0  ;;  %v187_v2 = vsel %vm185_vm0, %v54_v0, 0  ;;  %v1039_v5 = vld [vmem:[%s1304_s0 + $0x18] sm:$0xff]   ;;  %v1041_v7 = vld [vmem:[%s1304_s0 + $0x28] sm:$0xff]  }
   0x3   :  { %964 = vmatpush3.bf16.msra.mxu0 %v187_v2  ;;  %965 = vmatprep.mubr.msk.bf16.mxu0 %vm136_vm1, %v1036_v1  ;;  %v1040_v6 = vld [vmem:[%s1304_s0 + $0x20] sm:$0xff]  }
   0x6   :  { %966 = vmatmul.mubr.msk.bf16.vlgmr.msra.gmra.mrb[0].mxu0 %vm136_vm1, %v1037_v3 }
   0x7   :  { %969 = vmatprep.mubr.msk.bf16.mxu0 %vm136_vm1, %v1038_v4 }
   0xe   :  { %970 = vmatmul.mubr.msk.bf16.gmra.mrb[4].mxu0 %vm136_vm1, %v1039_v5 }
   0xf   :  { %973 = vmatprep.mubr.msk.bf16.mxu0 %vm136_vm1, %v1040_v6 }
  0x10   :  { %10 = vsyncpa [#allocation3], 0  ;;  %v1042_v8 = vld [vmem:[%s1304_s0 + $0x30] sm:$0xff]   ;;  %v1043_v9 = vld [vmem:[%s1304_s0 + $0x38] sm:$0xff]   ;;  %v369_v19 = vlaneseq  ;;  %vm414_vm2 = vcmask 130048   ;;  %v1077_v34 = vmov 0  }
  0x11   :  { %v1044_v10 = vld [vmem:[%s1304_s0 + $0x40] sm:$0xff]   ;;  %v1045_v11 = vld [vmem:[%s1304_s0 + $0x48] sm:$0xff]   ;;  %v1046_v12 = vld [vmem:[%s1304_s0 + $0x50] sm:$0xff]   ;;  %vm839_vm3 = vcmask 1041409   ;;  %vm841_vm4 = vcmask 1042434   ;;  %vm843_vm5 = vcmask 1043459  }
  0x12   :  { %v1047_v13 = vld [vmem:[%s1304_s0 + $0x58] sm:$0xff]   ;;  %v1048_v14 = vld [vmem:[%s1304_s0 + $0x60] sm:$0xff]   ;;  %v1049_v15 = vld [vmem:[%s1304_s0 + $0x68] sm:$0xff]   ;;  %v1181_v20 = vshrl.u32 %v369_v19, 7  ;;  %vm845_vm6 = vcmask 1044484   ;;  %vm847_vm7 = vcmask 1045509  }
  0x13   :  { %v1050_v16 = vld [vmem:[%s1304_s0 + $0x70] sm:$0xff]   ;;  %v1051_v17 = vld [vmem:[%s1304_s0 + $0x78] sm:$0xff]   ;;  %v1052_v18 = vld [vmem:[%s1307_s3] sm:$0xff]   ;;  %vm849_vm8 = vcmask 1046534   ;;  %vm851_vm9 = vcmask 1047559   ;;  %s1078_s3 = smov [#allocation2]  }
  0x14   :  { %997 = vmatprep.subr.bf16.mxu1 %v1052_v18  ;;  %v55_v21 = vld [vmem:[%s1306_s2] sm:$0x1]  ;;  %v371_v23 = vsub.s32 0, %v1181_v20 }
  0x15   :  { %998 = vmatpush3.bf16.msra.mxu1 %v1052_v18  ;;  %v367_v22 = vpack.i.b16 %v55_v21, %v55_v21 }
  0x16   :  { %974 = vmatmul.mubr.msk.bf16.gmra.mrb[8].mxu0 %vm136_vm1, %v1041_v7 }
  0x17   :  { %977 = vmatprep.mubr.msk.bf16.mxu0 %vm136_vm1, %v1042_v8  ;;  %v1189_v26 = vrot.slane %v367_v22, %v371_v23 }
  0x1e   :  { %978 = vmatmul.mubr.msk.bf16.gmra.mrb[12].mxu0 %vm136_vm1, %v1043_v9 }
  0x1f   :  { %981 = vmatprep.mubr.msk.bf16.mxu0 %vm136_vm1, %v1044_v10 }
  0x26   :  { %982 = vmatmul.mubr.msk.bf16.gmra.mrb[16].mxu0 %vm136_vm1, %v1045_v11 }
  0x27   :  { %985 = vmatprep.mubr.msk.bf16.mxu0 %vm136_vm1, %v1046_v12 }
  0x2e   :  { %986 = vmatmul.mubr.msk.bf16.gmra.mrb[20].mxu0 %vm136_vm1, %v1047_v13 }
  0x2f   :  { %989 = vmatprep.mubr.msk.bf16.mxu0 %vm136_vm1, %v1048_v14 }
  0x36   :  { %990 = vmatmul.mubr.msk.bf16.gmra.mrb[24].mxu0 %vm136_vm1, %v1049_v15 }
  0x37   :  { %993 = vmatprep.mubr.msk.bf16.mxu0 %vm136_vm1, %v1050_v16 }
  0x3e   :  { %994 = vmatmul.mubr.msk.bf16.gmra.mrb[28].mxu0 %vm136_vm1, %v1051_v17 }
  0xd9   :  { %v967_v24 = vpop.f32.mrb[0].mxu0 }
  0xda   :  { %v223_v25 = vpop.f32.mrb[1].mxu0 }
  0xdb   :  { %v968_v27 = vpop.f32.mrb[2].mxu0 }
  0xdc   :  { %v351_v28 = vpack.c.bf16 %v968_v27, %v967_v24  ;;  %v226_v29 = vpop.f32.mrb[3].mxu0 }
  0xdd   :  { %v350_v30 = vpack.c.bf16 %v226_v29, %v223_v25 }
  0xde   :  { %v374_v31 = vadd.bf16 %v1189_v26, %v351_v28 }
  0xdf   :  { %v373_v32 = vadd.bf16 %v1189_v26, %v350_v30 }
  0xe0   :  { %v390_v36 = vmax.bf16 %v1077_v34, %v374_v31 }
  0xe1   :  { %v971_v33 = vpop.f32.mrb[4].mxu0  ;;  %v389_v35 = vmax.bf16 %v1077_v34, %v373_v32 }
  0xe2   :  { %v239_v37 = vpop.f32.mrb[5].mxu0 }
  0xe3   :  { %v972_v38 = vpop.f32.mrb[6].mxu0  ;;  %999 = vmatprep.mubr.msk.bf16.mxu1 %vm414_vm2, %v389_v35 }
  0xe4   :  { %v353_v39 = vpack.c.bf16 %v972_v38, %v971_v33  ;;  %v242_v40 = vpop.f32.mrb[7].mxu0  ;;  %1000 = vmatmul.mubr.msk.bf16.vlgmr.msra.gmra.mrb[0].mxu1 %vm414_vm2, %v390_v36 }
  0xe5   :  { %v352_v41 = vpack.c.bf16 %v242_v40, %v239_v37 }
  0xe6   :  { %v376_v42 = vadd.bf16 %v1189_v26, %v353_v39 }
  0xe7   :  { %v375_v43 = vadd.bf16 %v1189_v26, %v352_v41 }
  0xe8   :  { %v392_v46 = vmax.bf16 %v1077_v34, %v376_v42 }
  0xe9   :  { %v391_v44 = vmax.bf16 %v1077_v34, %v375_v43  ;;  %v975_v45 = vpop.f32.mrb[8].mxu0 }
  0xea   :  { %v255_v47 = vpop.f32.mrb[9].mxu0 }
  0xeb   :  { %v976_v48 = vpop.f32.mrb[10].mxu0  ;;  %1003 = vmatprep.mubr.msk.bf16.mxu1 %vm414_vm2, %v391_v44 }
  0xec   :  { %v355_v49 = vpack.c.bf16 %v976_v48, %v975_v45  ;;  %v258_v50 = vpop.f32.mrb[11].mxu0  ;;  %1004 = vmatmul.mubr.msk.bf16.gmra.mrb[4].mxu1 %vm414_vm2, %v392_v46  ;;  %v407_v46 = vld [vmem:[%s1308_s4] sm:$0x1]  ;;  %s869_s4 = sshll.u32 %s1078_s3, 4  ;;  %s870_s4 = int_to_ptr.vmem [resolvable:$true] %s869_s4 }
  0xed   :  { %v354_v51 = vpack.c.bf16 %v258_v50, %v255_v47  ;;  %v641_v47 = vpack.i.b16 %v407_v46, %v407_v46  ;;  %s1053_s29 = scalar_lea.vmem %s870_s4, 256  ;;  %p1058_p1 = scmp.lt.s32.totalorder %s870_s4, %s870_s4 }
  0xee   :  { %v378_v52 = vadd.bf16 %v1189_v26, %v355_v49  ;;  %p1054_p0 = scmp.ne.s32.totalorder %s870_s4, %s1053_s29  ;;  %p1059_p2 = scmp.lt.s32.totalorder %s1053_s29, %s1053_s29 }
  0xef   :  { %v377_v53 = vadd.bf16 %v1189_v26, %v354_v51  ;;  %v1244_v50 = vrot.slane %v641_v47, %v371_v23 }
  0xf0   :  { %v394_v56 = vmax.bf16 %v1077_v34, %v378_v52  ;;  %p1060_p3 = por %p1059_p2, %p1058_p1 }
  0xf1   :  { %v393_v54 = vmax.bf16 %v1077_v34, %v377_v53  ;;  %v979_v55 = vpop.f32.mrb[12].mxu0 }
  0xf2   :  { %v271_v57 = vpop.f32.mrb[13].mxu0  ;;  %p1061_p4 = pnand %p1060_p3, %p1054_p0 }
  0xf3   :  { %v980_v58 = vpop.f32.mrb[14].mxu0  ;;  %1007 = vmatprep.mubr.msk.bf16.mxu1 %vm414_vm2, %v393_v54 }
  0xf4   :  { %v357_v59 = vpack.c.bf16 %v980_v58, %v979_v55  ;;  %v274_v60 = vpop.f32.mrb[15].mxu0  ;;  %1008 = vmatmul.mubr.msk.bf16.gmra.mrb[8].mxu1 %vm414_vm2, %v394_v56 }
  0xf5   :  { %v356_v61 = vpack.c.bf16 %v274_v60, %v271_v57 }
  0xf6   :  { %v380_v62 = vadd.bf16 %v1189_v26, %v357_v59 }
  0xf7   :  { %v379_v63 = vadd.bf16 %v1189_v26, %v356_v61 }
  0xf8   :  { %v396_v2 = vmax.bf16 %v1077_v34, %v380_v62 }
  0xf9   :  { %v395_v0 = vmax.bf16 %v1077_v34, %v379_v63  ;;  %v983_v1 = vpop.f32.mrb[16].mxu0 }
  0xfa   :  { %v287_v3 = vpop.f32.mrb[17].mxu0 }
  0xfb   :  { %v984_v4 = vpop.f32.mrb[18].mxu0  ;;  %1011 = vmatprep.mubr.msk.bf16.mxu1 %vm414_vm2, %v395_v0 }
  0xfc   :  { %v359_v5 = vpack.c.bf16 %v984_v4, %v983_v1  ;;  %v290_v6 = vpop.f32.mrb[19].mxu0  ;;  %1012 = vmatmul.mubr.msk.bf16.gmra.mrb[12].mxu1 %vm414_vm2, %v396_v2 }
  0xfd   :  { %v358_v7 = vpack.c.bf16 %v290_v6, %v287_v3 }
  0xfe   :  { %v382_v8 = vadd.bf16 %v1189_v26, %v359_v5 }
  0xff   :  { %v381_v9 = vadd.bf16 %v1189_v26, %v358_v7 }
 0x100   :  { %v398_v12 = vmax.bf16 %v1077_v34, %v382_v8 }
 0x101   :  { %v397_v10 = vmax.bf16 %v1077_v34, %v381_v9  ;;  %v987_v11 = vpop.f32.mrb[20].mxu0 }
 0x102   :  { %v303_v13 = vpop.f32.mrb[21].mxu0 }
 0x103   :  { %v988_v14 = vpop.f32.mrb[22].mxu0  ;;  %1015 = vmatprep.mubr.msk.bf16.mxu1 %vm414_vm2, %v397_v10 }
 0x104   :  { %v361_v15 = vpack.c.bf16 %v988_v14, %v987_v11  ;;  %v306_v16 = vpop.f32.mrb[23].mxu0  ;;  %1016 = vmatmul.mubr.msk.bf16.gmra.mrb[16].mxu1 %vm414_vm2, %v398_v12 }
 0x105   :  { %v360_v17 = vpack.c.bf16 %v306_v16, %v303_v13 }
 0x106   :  { %v384_v18 = vadd.bf16 %v1189_v26, %v361_v15 }
 0x107   :  { %v383_v19 = vadd.bf16 %v1189_v26, %v360_v17 }
 0x108   :  { %v400_v24 = vmax.bf16 %v1077_v34, %v384_v18 }
 0x109   :  { %v399_v21 = vmax.bf16 %v1077_v34, %v383_v19  ;;  %v991_v22 = vpop.f32.mrb[24].mxu0 }
 0x10a   :  { %v319_v25 = vpop.f32.mrb[25].mxu0 }
 0x10b   :  { %v992_v27 = vpop.f32.mrb[26].mxu0  ;;  %1019 = vmatprep.mubr.msk.bf16.mxu1 %vm414_vm2, %v399_v21 }
 0x10c   :  { %v363_v28 = vpack.c.bf16 %v992_v27, %v991_v22  ;;  %v322_v29 = vpop.f32.mrb[27].mxu0  ;;  %1020 = vmatmul.mubr.msk.bf16.gmra.mrb[20].mxu1 %vm414_vm2, %v400_v24 }
 0x10d   :  { %v362_v30 = vpack.c.bf16 %v322_v29, %v319_v25 }
 0x10e   :  { %v386_v31 = vadd.bf16 %v1189_v26, %v363_v28 }
 0x10f   :  { %v385_v32 = vadd.bf16 %v1189_v26, %v362_v30 }
 0x110   :  { %v402_v36 = vmax.bf16 %v1077_v34, %v386_v31 }
 0x111   :  { %v401_v33 = vmax.bf16 %v1077_v34, %v385_v32  ;;  %v995_v35 = vpop.f32.mrb[28].mxu0 }
 0x112   :  { %v335_v37 = vpop.f32.mrb[29].mxu0 }
 0x113   :  { %v996_v38 = vpop.f32.mrb[30].mxu0  ;;  %1023 = vmatprep.mubr.msk.bf16.mxu1 %vm414_vm2, %v401_v33 }
 0x114   :  { %v365_v39 = vpack.c.bf16 %v996_v38, %v995_v35  ;;  %v338_v40 = vpop.f32.mrb[31].mxu0  ;;  %1024 = vmatmul.mubr.msk.bf16.gmra.mrb[24].mxu1 %vm414_vm2, %v402_v36 }
 0x115   :  { %v364_v41 = vpack.c.bf16 %v338_v40, %v335_v37 }
 0x116   :  { %v388_v42 = vadd.bf16 %v1189_v26, %v365_v39 }
 0x117   :  { %v387_v43 = vadd.bf16 %v1189_v26, %v364_v41 }
 0x118   :  { %v404_v45 = vmax.bf16 %v1077_v34, %v388_v42 }
 0x119   :  { %v403_v44 = vmax.bf16 %v1077_v34, %v387_v43 }
 0x11b   :  { %1027 = vmatprep.mubr.msk.bf16.mxu1 %vm414_vm2, %v403_v44 }
 0x11c   :  { %1028 = vmatmul.mubr.msk.bf16.gmra.mrb[28].mxu1 %vm414_vm2, %v404_v45 }
 0x1b7   :  { %v1001_v48 = vpop.f32.mrb[0].mxu1 }
 0x1b8   :  { %v497_v49 = vpop.f32.mrb[1].mxu1 }
 0x1b9   :  { %v1002_v26 = vpop.f32.mrb[2].mxu1 }
 0x1ba   :  { %v625_v51 = vpack.c.bf16 %v1002_v26, %v1001_v48  ;;  %v500_v52 = vpop.f32.mrb[3].mxu1 }
 0x1bb   :  { %v624_v53 = vpack.c.bf16 %v500_v52, %v497_v49 }
 0x1bc   :  { %v648_v54 = vadd.bf16 %v1244_v50, %v625_v51 }
 0x1bd   :  { %v647_v55 = vadd.bf16 %v1244_v50, %v624_v53 }
 0x1be   :  { %v664_v56 = vmax.bf16 %v1077_v34, %v648_v54 }
 0x1bf   :  { %v663_v57 = vmax.bf16 %v1077_v34, %v647_v55  ;;  %v1005_v58 = vpop.f32.mrb[4].mxu1 }
 0x1c0   :  { %v681_v59 = vunpack.c.l.bf16 %v664_v56  ;;  %v682_v60 = vunpack.c.h.bf16 %v664_v56  ;;  %v513_v61 = vpop.f32.mrb[5].mxu1 }
 0x1c1   :  { %v679_v62 = vunpack.c.l.bf16 %v663_v57  ;;  %v680_v20 = vunpack.c.h.bf16 %v663_v57  ;;  %v1006_v23 = vpop.f32.mrb[6].mxu1 }
 0x1c2   :  { %v718_v63 = vmax.f32 %v681_v59, %v682_v60  ;;  %v627_v0 = vpack.c.bf16 %v1006_v23, %v1005_v58  ;;  %v516_v1 = vpop.f32.mrb[7].mxu1 }
 0x1c3   :  { %v711_v2 = vmax.f32 %v679_v62, %v680_v20  ;;  %v626_v3 = vpack.c.bf16 %v516_v1, %v513_v61 }
 0x1c4   :  { %v719_v4 = vrot.slane %v718_v63, 4  ;;  %v650_v5 = vadd.bf16 %v1244_v50, %v627_v0 }
 0x1c5   :  { %v712_v6 = vrot.slane %v711_v2, 4  ;;  %v649_v7 = vadd.bf16 %v1244_v50, %v626_v3 }
 0x1c6   :  { %v720_v8 = vmax.f32 %v718_v63, %v719_v4  ;;  %v666_v9 = vmax.bf16 %v1077_v34, %v650_v5 }
 0x1c7   :  { %v713_v10 = vmax.f32 %v711_v2, %v712_v6  ;;  %v665_v11 = vmax.bf16 %v1077_v34, %v649_v7  ;;  %v1009_v12 = vpop.f32.mrb[8].mxu1 }
 0x1c8   :  { %v721_v13 = vrot.slane %v720_v8, 2  ;;  %v685_v14 = vunpack.c.l.bf16 %v666_v9  ;;  %v686_v15 = vunpack.c.h.bf16 %v666_v9  ;;  %v529_v16 = vpop.f32.mrb[9].mxu1 }
 0x1c9   :  { %v714_v17 = vrot.slane %v713_v10, 2  ;;  %v683_v18 = vunpack.c.l.bf16 %v665_v11  ;;  %v684_v19 = vunpack.c.h.bf16 %v665_v11  ;;  %v1010_v21 = vpop.f32.mrb[10].mxu1 }
 0x1ca   :  { %v722_v22 = vmax.f32 %v720_v8, %v721_v13  ;;  %v732_v24 = vmax.f32 %v685_v14, %v686_v15  ;;  %v629_v25 = vpack.c.bf16 %v1010_v21, %v1009_v12  ;;  %v532_v27 = vpop.f32.mrb[11].mxu1 }
 0x1cb   :  { %v715_v28 = vmax.f32 %v713_v10, %v714_v17  ;;  %v725_v29 = vmax.f32 %v683_v18, %v684_v19  ;;  %v628_v30 = vpack.c.bf16 %v532_v27, %v529_v16 }
 0x1cc   :  { %v723_v31 = vrot.slane %v722_v22, 1  ;;  %v733_v32 = vrot.slane %v732_v24, 4  ;;  %v652_v33 = vadd.bf16 %v1244_v50, %v629_v25 }
 0x1cd   :  { %v716_v35 = vrot.slane %v715_v28, 1  ;;  %v726_v36 = vrot.slane %v725_v29, 4  ;;  %v651_v37 = vadd.bf16 %v1244_v50, %v628_v30 }
 0x1ce   :  { %v724_v38 = vmax.f32 %v722_v22, %v723_v31  ;;  %v734_v39 = vmax.f32 %v732_v24, %v733_v32  ;;  %v668_v40 = vmax.bf16 %v1077_v34, %v652_v33 }
 0x1cf   :  { %v717_v41 = vmax.f32 %v715_v28, %v716_v35  ;;  %v727_v42 = vmax.f32 %v725_v29, %v726_v36  ;;  %v667_v43 = vmax.bf16 %v1077_v34, %v651_v37  ;;  %v1013_v44 = vpop.f32.mrb[12].mxu1 }
 0x1d0   :  { %v735_v45 = vrot.slane %v734_v39, 2  ;;  %v689_v46 = vunpack.c.l.bf16 %v668_v40  ;;  %v690_v47 = vunpack.c.h.bf16 %v668_v40  ;;  %v545_v48 = vpop.f32.mrb[13].mxu1 }
 0x1d1   :  { %v840_v49 = vsel %vm839_vm3, %v724_v38, %v717_v41  ;;  %v728_v26 = vrot.slane %v727_v42, 2  ;;  %v687_v51 = vunpack.c.l.bf16 %v667_v43  ;;  %v688_v52 = vunpack.c.h.bf16 %v667_v43  ;;  %v1014_v53 = vpop.f32.mrb[14].mxu1 }
 0x1d2   :  { %v736_v54 = vmax.f32 %v734_v39, %v735_v45  ;;  %v746_v55 = vmax.f32 %v689_v46, %v690_v47  ;;  %v631_v56 = vpack.c.bf16 %v1014_v53, %v1013_v44  ;;  %v548_v57 = vpop.f32.mrb[15].mxu1 }
 0x1d3   :  { %v729_v58 = vmax.f32 %v727_v42, %v728_v26  ;;  %v739_v59 = vmax.f32 %v687_v51, %v688_v52  ;;  %v630_v60 = vpack.c.bf16 %v548_v57, %v545_v48 }
 0x1d4   :  { %v737_v61 = vrot.slane %v736_v54, 1  ;;  %v747_v62 = vrot.slane %v746_v55, 4  ;;  %v654_v20 = vadd.bf16 %v1244_v50, %v631_v56 }
 0x1d5   :  { %v730_v23 = vrot.slane %v729_v58, 1  ;;  %v740_v63 = vrot.slane %v739_v59, 4  ;;  %v653_v0 = vadd.bf16 %v1244_v50, %v630_v60 }
 0x1d6   :  { %v748_v1 = vmax.f32 %v746_v55, %v747_v62  ;;  %v670_v2 = vmax.bf16 %v1077_v34, %v654_v20  ;;  %v738_v7 = vmax.f32 %v736_v54, %v737_v61 }
 0x1d7   :  { %v731_v3 = vmax.f32 %v729_v58, %v730_v23  ;;  %v741_v4 = vmax.f32 %v739_v59, %v740_v63  ;;  %v669_v5 = vmax.bf16 %v1077_v34, %v653_v0  ;;  %v1017_v6 = vpop.f32.mrb[16].mxu1 }
 0x1d8   :  { %v749_v8 = vrot.slane %v748_v1, 2  ;;  %v693_v9 = vunpack.c.l.bf16 %v670_v2  ;;  %v694_v10 = vunpack.c.h.bf16 %v670_v2  ;;  %v561_v11 = vpop.f32.mrb[17].mxu1 }
 0x1d9   :  { %v842_v12 = vsel %vm841_vm4, %v731_v3, %v840_v49  ;;  %v742_v13 = vrot.slane %v741_v4, 2  ;;  %v691_v14 = vunpack.c.l.bf16 %v669_v5  ;;  %v692_v15 = vunpack.c.h.bf16 %v669_v5  ;;  %v1018_v16 = vpop.f32.mrb[18].mxu1 }
 0x1da   :  { %v750_v17 = vmax.f32 %v748_v1, %v749_v8  ;;  %v760_v18 = vmax.f32 %v693_v9, %v694_v10  ;;  %v633_v19 = vpack.c.bf16 %v1018_v16, %v1017_v6  ;;  %v564_v21 = vpop.f32.mrb[19].mxu1  ;;  %v844_v22 = vsel %vm843_vm5, %v738_v7, %v842_v12 }
 0x1db   :  { %v743_v24 = vmax.f32 %v741_v4, %v742_v13  ;;  %v753_v25 = vmax.f32 %v691_v14, %v692_v15  ;;  %v632_v27 = vpack.c.bf16 %v564_v21, %v561_v11 }
 0x1dc   :  { %v751_v28 = vrot.slane %v750_v17, 1  ;;  %v761_v29 = vrot.slane %v760_v18, 4  ;;  %v656_v30 = vadd.bf16 %v1244_v50, %v633_v19 }
 0x1dd   :  { %v744_v31 = vrot.slane %v743_v24, 1  ;;  %v754_v32 = vrot.slane %v753_v25, 4  ;;  %v655_v33 = vadd.bf16 %v1244_v50, %v632_v27 }
 0x1de   :  { %v762_v35 = vmax.f32 %v760_v18, %v761_v29  ;;  %v672_v36 = vmax.bf16 %v1077_v34, %v656_v30  ;;  %v752_v41 = vmax.f32 %v750_v17, %v751_v28 }
 0x1df   :  { %v745_v37 = vmax.f32 %v743_v24, %v744_v31  ;;  %v755_v38 = vmax.f32 %v753_v25, %v754_v32  ;;  %v671_v39 = vmax.bf16 %v1077_v34, %v655_v33  ;;  %v1021_v40 = vpop.f32.mrb[20].mxu1 }
 0x1e0   :  { %v763_v42 = vrot.slane %v762_v35, 2  ;;  %v697_v43 = vunpack.c.l.bf16 %v672_v36  ;;  %v698_v44 = vunpack.c.h.bf16 %v672_v36  ;;  %v577_v45 = vpop.f32.mrb[21].mxu1 }
 0x1e1   :  { %v756_v46 = vrot.slane %v755_v38, 2  ;;  %v695_v47 = vunpack.c.l.bf16 %v671_v39  ;;  %v696_v48 = vunpack.c.h.bf16 %v671_v39  ;;  %v1022_v49 = vpop.f32.mrb[22].mxu1  ;;  %v846_v26 = vsel %vm845_vm6, %v745_v37, %v844_v22 }
 0x1e2   :  { %v764_v51 = vmax.f32 %v762_v35, %v763_v42  ;;  %v774_v52 = vmax.f32 %v697_v43, %v698_v44  ;;  %v635_v53 = vpack.c.bf16 %v1022_v49, %v1021_v40  ;;  %v580_v54 = vpop.f32.mrb[23].mxu1  ;;  %v848_v55 = vsel %vm847_vm7, %v752_v41, %v846_v26 }
 0x1e3   :  { %v757_v56 = vmax.f32 %v755_v38, %v756_v46  ;;  %v767_v57 = vmax.f32 %v695_v47, %v696_v48  ;;  %v634_v58 = vpack.c.bf16 %v580_v54, %v577_v45 }
 0x1e4   :  { %v765_v59 = vrot.slane %v764_v51, 1  ;;  %v775_v60 = vrot.slane %v774_v52, 4  ;;  %v658_v61 = vadd.bf16 %v1244_v50, %v635_v53 }
 0x1e5   :  { %v758_v62 = vrot.slane %v757_v56, 1  ;;  %v768_v20 = vrot.slane %v767_v57, 4  ;;  %v657_v23 = vadd.bf16 %v1244_v50, %v634_v58 }
 0x1e6   :  { %v776_v63 = vmax.f32 %v774_v52, %v775_v60  ;;  %v674_v0 = vmax.bf16 %v1077_v34, %v658_v61  ;;  %v766_v9 = vmax.f32 %v764_v51, %v765_v59 }
 0x1e7   :  { %v759_v1 = vmax.f32 %v757_v56, %v758_v62  ;;  %v769_v2 = vmax.f32 %v767_v57, %v768_v20  ;;  %v673_v3 = vmax.bf16 %v1077_v34, %v657_v23  ;;  %v1025_v4 = vpop.f32.mrb[24].mxu1 }
 0x1e8   :  { %v777_v5 = vrot.slane %v776_v63, 2  ;;  %v701_v6 = vunpack.c.l.bf16 %v674_v0  ;;  %v702_v7 = vunpack.c.h.bf16 %v674_v0  ;;  %v593_v8 = vpop.f32.mrb[25].mxu1 }
 0x1e9   :  { %v770_v10 = vrot.slane %v769_v2, 2  ;;  %v699_v11 = vunpack.c.l.bf16 %v673_v3  ;;  %v700_v12 = vunpack.c.h.bf16 %v673_v3  ;;  %v1026_v13 = vpop.f32.mrb[26].mxu1  ;;  %v850_v14 = vsel %vm849_vm8, %v759_v1, %v848_v55 }
 0x1ea   :  { %v778_v15 = vmax.f32 %v776_v63, %v777_v5  ;;  %v788_v16 = vmax.f32 %v701_v6, %v702_v7  ;;  %v637_v17 = vpack.c.bf16 %v1026_v13, %v1025_v4  ;;  %v596_v18 = vpop.f32.mrb[27].mxu1  ;;  %v852_v19 = vsel %vm851_vm9, %v766_v9, %v850_v14 }
 0x1eb   :  { %v771_v21 = vmax.f32 %v769_v2, %v770_v10  ;;  %v781_v22 = vmax.f32 %v699_v11, %v700_v12  ;;  %v636_v24 = vpack.c.bf16 %v596_v18, %v593_v8  ;;  %862 = vst [vmem:[#allocation2] sm:$0xff] %v852_v19 }
 0x1ec   :  { %v779_v25 = vrot.slane %v778_v15, 1  ;;  %v789_v27 = vrot.slane %v788_v16, 4  ;;  %v660_v28 = vadd.bf16 %v1244_v50, %v637_v17 }
 0x1ed   :  { %v772_v29 = vrot.slane %v771_v21, 1  ;;  %v782_v30 = vrot.slane %v781_v22, 4  ;;  %v659_v31 = vadd.bf16 %v1244_v50, %v636_v24 }
 0x1ee   :  { %v780_v32 = vmax.f32 %v778_v15, %v779_v25  ;;  %v790_v33 = vmax.f32 %v788_v16, %v789_v27  ;;  %v676_v35 = vmax.bf16 %v1077_v34, %v660_v28 }
 0x1ef   :  { %v773_v36 = vmax.f32 %v771_v21, %v772_v29  ;;  %v783_v37 = vmax.f32 %v781_v22, %v782_v30  ;;  %v675_v38 = vmax.bf16 %v1077_v34, %v659_v31  ;;  %v1029_v39 = vpop.f32.mrb[28].mxu1 }
 0x1f0   :  { %v791_v40 = vrot.slane %v790_v33, 2  ;;  %v705_v41 = vunpack.c.l.bf16 %v676_v35  ;;  %v706_v42 = vunpack.c.h.bf16 %v676_v35  ;;  %v609_v43 = vpop.f32.mrb[29].mxu1 }
 0x1f1   :  { %v853_v44 = vsel %vm839_vm3, %v780_v32, %v773_v36  ;;  %v784_v45 = vrot.slane %v783_v37, 2  ;;  %v703_v46 = vunpack.c.l.bf16 %v675_v38  ;;  %v704_v47 = vunpack.c.h.bf16 %v675_v38  ;;  %v1030_v48 = vpop.f32.mrb[30].mxu1 }
 0x1f2   :  { %v792_v49 = vmax.f32 %v790_v33, %v791_v40  ;;  %v802_v26 = vmax.f32 %v705_v41, %v706_v42  ;;  %v639_v51 = vpack.c.bf16 %v1030_v48, %v1029_v39  ;;  %v612_v52 = vpop.f32.mrb[31].mxu1 }
 0x1f3   :  { %v785_v53 = vmax.f32 %v783_v37, %v784_v45  ;;  %v795_v54 = vmax.f32 %v703_v46, %v704_v47  ;;  %v638_v55 = vpack.c.bf16 %v612_v52, %v609_v43 }
 0x1f4   :  { %v793_v56 = vrot.slane %v792_v49, 1  ;;  %v803_v57 = vrot.slane %v802_v26, 4  ;;  %v662_v58 = vadd.bf16 %v1244_v50, %v639_v51 }
 0x1f5   :  { %v786_v59 = vrot.slane %v785_v53, 1  ;;  %v796_v60 = vrot.slane %v795_v54, 4  ;;  %v661_v61 = vadd.bf16 %v1244_v50, %v638_v55 }
 0x1f6   :  { %v804_v62 = vmax.f32 %v802_v26, %v803_v57  ;;  %v678_v20 = vmax.bf16 %v1077_v34, %v662_v58  ;;  %v794_v1 = vmax.f32 %v792_v49, %v793_v56 }
 0x1f7   :  { %v787_v23 = vmax.f32 %v785_v53, %v786_v59  ;;  %v797_v63 = vmax.f32 %v795_v54, %v796_v60  ;;  %v677_v0 = vmax.bf16 %v1077_v34, %v661_v61 }
 0x1f8   :  { %v805_v2 = vrot.slane %v804_v62, 2  ;;  %v709_v3 = vunpack.c.l.bf16 %v678_v20  ;;  %v710_v4 = vunpack.c.h.bf16 %v678_v20 }
 0x1f9   :  { %v854_v5 = vsel %vm841_vm4, %v787_v23, %v853_v44  ;;  %v798_v6 = vrot.slane %v797_v63, 2  ;;  %v707_v7 = vunpack.c.l.bf16 %v677_v0  ;;  %v708_v8 = vunpack.c.h.bf16 %v677_v0 }
 0x1fa   :  { %v806_v9 = vmax.f32 %v804_v62, %v805_v2  ;;  %v816_v10 = vmax.f32 %v709_v3, %v710_v4  ;;  %v855_v50 = vsel %vm843_vm5, %v794_v1, %v854_v5 }
 0x1fb   :  { %v799_v11 = vmax.f32 %v797_v63, %v798_v6  ;;  %v809_v12 = vmax.f32 %v707_v7, %v708_v8 }
 0x1fc   :  { %v807_v13 = vrot.slane %v806_v9, 1  ;;  %v817_v14 = vrot.slane %v816_v10, 4 }
 0x1fd   :  { %v800_v15 = vrot.slane %v799_v11, 1  ;;  %v810_v16 = vrot.slane %v809_v12, 4 }
 0x1fe   :  { %v818_v34 = vmax.f32 %v816_v10, %v817_v14  ;;  %v808_v19 = vmax.f32 %v806_v9, %v807_v13 }
 0x1ff   :  { %v801_v17 = vmax.f32 %v799_v11, %v800_v15  ;;  %v811_v18 = vmax.f32 %v809_v12, %v810_v16 }
 0x200   :  { %v819_v21 = vrot.slane %v818_v34, 2 }
 0x201   :  { %v812_v22 = vrot.slane %v811_v18, 2  ;;  %v856_v24 = vsel %vm845_vm6, %v801_v17, %v855_v50 }
 0x202   :  { %v820_v25 = vmax.f32 %v818_v34, %v819_v21  ;;  %v857_v27 = vsel %vm847_vm7, %v808_v19, %v856_v24 }
 0x203   :  { %v813_v28 = vmax.f32 %v811_v18, %v812_v22 }
 0x204   :  { %v821_v29 = vrot.slane %v820_v25, 1 }
 0x205   :  { %v814_v30 = vrot.slane %v813_v28, 1 }
 0x206   :  { %v822_v32 = vmax.f32 %v820_v25, %v821_v29 }
 0x207   :  { %v815_v31 = vmax.f32 %v813_v28, %v814_v30 }
 0x209   :  { %v858_v33 = vsel %vm849_vm8, %v815_v31, %v857_v27 }
 0x20a   :  { %v859_v35 = vsel %vm851_vm9, %v822_v32, %v858_v33 }
 0x20b   :  { %863 = vst [vmem:[#allocation2 + $0x8] sm:$0xff] %v859_v35 }
 0x20c   :  { %1064 = shalt.err (!%p1061_p4)
}
 0x20d   :  { %s1065_s7 = scalar_lea.hbm %s1309_s5, 256 }
 0x20e   :  { %p1066_p5 = scmp.ne.s32.totalorder %s1309_s5, %s1065_s7  ;;  %p1069_p6 = scmp.lt.u32.totalorder %s1065_s7, %s1309_s5 }
 0x210   :  { %p1071_p7 = pnand %p1069_p6, %p1066_p5 }
 0x212   :  { %1074 = shalt.err (!%p1071_p7)
}
 0x213   :  { %s1079_s12 = smov 128   ;;  %s1080_s13 = smov 8  }
 0x214   :  { %875 = dma.vmem_to_hbm [thread:$0]  %s870_s4, 256, %s1309_s5, [#allocation3], %s1079_s12, %s1079_s12, %s1080_s13  }
 0x215   :  { %1075 = dma.done.wait [#allocation3], 256  }
 0x216   :  { %1076 = vsyncadd [#allocation3], 4294967040 }
 0x217   :  { %879 = vsyncpa [#allocation3], 1 }

</bundles_post_ra>
